<compile_context>
chip_gen: v5e
topology: v5e:2x2
jax: 0.10.0
libtpu: 0.0.40
codegen_flags: <defaults>
</compile_context>

<pallas_src>
import jax
import jax.numpy as jnp
from jax.experimental import pallas as pl
from jax.experimental.pallas import tpu as pltpu

LANES = 128
SUBLANES = 8
NEG_CLAMP = 18.420680743952367  # -log(1e-8): reference's saturation value.


def _chip_kind() -> str:
    try:
        return jax.devices()[0].device_kind.lower()
    except Exception:
        return ""


_KIND = _chip_kind()
# 2 TensorCores per chip only on v7x; on v5e/v6e a 'parallel' leading axis is
# just a wasted serial step (duplicate block read + extra init/finalize).
_NCORES = 2 if "v7" in _KIND else 1
# Bigger blocks on v7x where the ~0.35us per-grid-step overhead dominates the
# ~0.3us per-step DMA; 2048 rows (1 MiB f32/block) elsewhere keeps the
# 2 inputs x 2 buffers within v5e's 16 MiB default scoped VMEM.
_MAX_BLOCK_ROWS = 4096 if "v7" in _KIND else 2048


def _exloss_kernel(n_sref, x_ref, t_ref, out_ref, acc_pos, acc_neg, acc_cnt):
    p = pl.program_id(0)           # TensorCore shard ("parallel")
    i = pl.program_id(1)           # block within shard ("arbitrary")
    n_inner = pl.num_programs(1)

    @pl.when(i == 0)
    def _():
        acc_pos[...] = jnp.zeros_like(acc_pos)
        acc_neg[...] = jnp.zeros_like(acc_neg)
        acc_cnt[...] = jnp.zeros_like(acc_cnt)

    block_rows, lanes = x_ref.shape
    block_elems = block_rows * lanes
    blk = p * n_inner + i
    n_total = n_sref[0]

    x = x_ref[...].astype(jnp.float32)
    t = t_ref[...].astype(jnp.float32)

    # softplus(-x) = -log(sigmoid(x));  softplus(-x) + x = -log(1 - sigmoid(x)).
    # Plain log(1 + e) (e in (0,1]) instead of log1p keeps lowering simple; the
    # absolute error (<1.2e-7) only appears where the reference's +1e-8 guard
    # already perturbs the value, and the clamp below reproduces that guard's
    # saturation behaviour for large positive logits.
    sp_negx = jnp.maximum(-x, 0.0) + jnp.log(1.0 + jnp.exp(-jnp.abs(x)))
    neg_val = jnp.minimum(sp_negx + x, NEG_CLAMP)
    pos = t > 0.001

    def fold(a):  # (block_rows, 128) -> (8, 128): pure vreg adds.
        return a.reshape(-1, SUBLANES, LANES).sum(axis=0)

    def accumulate(pos_m, neg_m):
        acc_pos[...] += fold(jnp.where(pos_m, t * sp_negx, 0.0))
        acc_neg[...] += fold(jnp.where(neg_m, neg_val, 0.0))
        acc_cnt[...] += fold(pos_m.astype(jnp.float32))

    # Fast path: interior blocks are fully valid -> no iota/compare/AND chain.
    is_interior = (blk + 1) * block_elems <= n_total

    @pl.when(is_interior)
    def _():
        accumulate(pos, jnp.logical_not(pos))

    @pl.when(jnp.logical_not(is_interior))
    def _():
        # Tail block (zero-padded) or a clamped duplicate block: mask by global
        # flat index against the true element count.
        row_ids = jax.lax.broadcasted_iota(jnp.int32, (block_rows, lanes), 0)
        lane_ids = jax.lax.broadcasted_iota(jnp.int32, (block_rows, lanes), 1)
        gidx = blk * block_elems + row_ids * lanes + lane_ids
        valid = gidx < n_total
        accumulate(jnp.logical_and(valid, pos),
                   jnp.logical_and(valid, jnp.logical_not(pos)))

    @pl.when(i == n_inner - 1)
    def _():
        out_ref[0, 0] = acc_pos[...]
        out_ref[0, 1] = acc_neg[...]
        out_ref[0, 2] = acc_cnt[...]


@jax.jit
def ex_loss(inp, target):
    assert inp.shape == target.shape
    n = inp.size

    x = inp.reshape(-1)      # keep native dtype in HBM; upcast in-kernel
    t = target.reshape(-1)

    tile = SUBLANES * LANES
    rows = pl.cdiv(n, tile) * SUBLANES          # row count, multiple of 8
    block_rows = min(_MAX_BLOCK_ROWS, rows)     # multiple of 8, never > rows
    n_blocks = pl.cdiv(rows, block_rows)
    rows_padded = n_blocks * block_rows         # grid tiles the array exactly
    pad = rows_padded * LANES - n
    if pad:
        x = jnp.pad(x, (0, pad))
        t = jnp.pad(t, (0, pad))
    x2 = x.reshape(rows_padded, LANES)
    t2 = t.reshape(rows_padded, LANES)

    ncores = min(_NCORES, n_blocks)
    bpc = pl.cdiv(n_blocks, ncores)             # blocks per core shard

    def in_map(p, i, n_sref):
        # Clamp so the block index is always in-bounds; out-of-range (p, i)
        # pairs re-read the last block and are fully masked in-kernel.
        return (jnp.minimum(p * bpc + i, n_blocks - 1), 0)

    parts = pl.pallas_call(
        _exloss_kernel,
        out_shape=jax.ShapeDtypeStruct((ncores, 3, SUBLANES, LANES), jnp.float32),
        grid_spec=pltpu.PrefetchScalarGridSpec(
            num_scalar_prefetch=1,
            grid=(ncores, bpc),
            in_specs=[
                pl.BlockSpec((block_rows, LANES), in_map),
                pl.BlockSpec((block_rows, LANES), in_map),
            ],
            out_specs=pl.BlockSpec((1, 3, SUBLANES, LANES),
                                   lambda p, i, n_sref: (p, 0, 0, 0)),
            scratch_shapes=[
                pltpu.VMEM((SUBLANES, LANES), jnp.float32),
                pltpu.VMEM((SUBLANES, LANES), jnp.float32),
                pltpu.VMEM((SUBLANES, LANES), jnp.float32),
            ],
        ),
        compiler_params=pltpu.CompilerParams(
            dimension_semantics=("parallel", "arbitrary")),
    )(jnp.array([n], dtype=jnp.int32), x2, t2)

    sum_pos = jnp.sum(parts[:, 0])
    sum_neg = jnp.sum(parts[:, 1])
    num_pos = jnp.sum(parts[:, 2])
    num_neg = jnp.float32(n) - num_pos          # pos/neg partition all elements

    loss = jnp.where(num_pos > 0, sum_pos / num_pos, 0.0)
    loss = loss + jnp.where(num_neg > 0, sum_neg / num_neg, 0.0)
    return loss


def ex_loss_ref(inp, target):
    """Pure-JAX reference mirroring the PyTorch forward."""
    x = inp.astype(jnp.float32)
    t = target.astype(jnp.float32)
    pos = t > 0.001
    neg = t <= 0.001
    sig = jax.nn.sigmoid(x)
    pos_loss = jnp.where(pos, -t * jnp.log(sig), 0.0)
    neg_loss = jnp.where(neg, -jnp.log(1.0 - sig + 1e-8), 0.0)
    num_pos = jnp.sum(pos)
    num_neg = jnp.sum(neg)
    loss = jnp.where(num_pos > 0, jnp.sum(pos_loss) / num_pos, 0.0)
    loss = loss + jnp.where(num_neg > 0, jnp.sum(neg_loss) / num_neg, 0.0)
    return loss


if __name__ == "__main__":
    key = jax.random.PRNGKey(0)
    k1, k2 = jax.random.split(key)

    # Typical use: predicted score map vs. (mostly-sparse) target map, NCHW-ish.
    shape = (2, 4, 16, 16)
    inp = jax.random.normal(k1, shape, dtype=jnp.float32)
    # ~20% positives in (0.1, 1.0], rest zeros.
    raw = jax.random.uniform(k2, shape, dtype=jnp.float32)
    target = jnp.where(raw > 0.8, raw, 0.0)

    loss = ex_loss(inp, target)
    jax.block_until_ready(loss)

    ref = ex_loss_ref(inp, target)
    assert jnp.allclose(loss, ref, rtol=1e-5, atol=1e-5), (loss, ref)

    print("KERNEL_OK")
</pallas_src>

<mosaic_0001>
module attributes {stable_mosaic.version = 11 : i64} {
  func.func @_exloss_kernel(%arg0: i32, %arg1: i32, %arg2: memref<1xi32, #tpu.memory_space<smem>>, %arg3: memref<16x128xf32, #tpu.memory_space<vmem>>, %arg4: memref<16x128xf32, #tpu.memory_space<vmem>>, %arg5: memref<1x3x8x128xf32, #tpu.memory_space<vmem>>, %arg6: memref<8x128xf32, #tpu.memory_space<vmem>>, %arg7: memref<8x128xf32, #tpu.memory_space<vmem>>, %arg8: memref<8x128xf32, #tpu.memory_space<vmem>>) attributes {dimension_semantics = [#tpu.dimension_semantics<parallel>, #tpu.dimension_semantics<arbitrary>], iteration_bounds = array<i64: 1, 1>, scalar_prefetch = 1 : i64, scratch_operands = 3 : i64, tpu.core_type = #tpu.core_type<tc>, window_params = [{transform_indices = @transform_0, window_bounds = array<i64: 16, 128>}, {transform_indices = @transform_1, window_bounds = array<i64: 16, 128>}, {transform_indices = @transform_2, window_bounds = array<i64: 1, 3, 8, 128>}]} {
    %c0_i32 = arith.constant 0 : i32
    %0 = arith.cmpi eq, %arg1, %c0_i32 : i32
    %1 = arith.extui %0 : i1 to i32
    %c0_i32_0 = arith.constant 0 : i32
    %2 = arith.cmpi ne, %1, %c0_i32_0 : i32
    scf.if %2 {
      %cst_15 = arith.constant 0.000000e+00 : f32
      %36 = vector.broadcast %cst_15 : f32 to vector<8x128xf32>
      %c0_16 = arith.constant 0 : index
      %c0_17 = arith.constant 0 : index
      %37 = vector.load %arg6[%c0_16, %c0_17] : memref<8x128xf32, #tpu.memory_space<vmem>>, vector<8x128xf32>
      tpu.vector_store %arg6[%c0_16, %c0_17], %36 {strides = array<i32>} : memref<8x128xf32, #tpu.memory_space<vmem>>, vector<8x128xf32>,
      %cst_18 = arith.constant 0.000000e+00 : f32
      %38 = vector.broadcast %cst_18 : f32 to vector<8x128xf32>
      %c0_19 = arith.constant 0 : index
      %c0_20 = arith.constant 0 : index
      %39 = vector.load %arg7[%c0_19, %c0_20] : memref<8x128xf32, #tpu.memory_space<vmem>>, vector<8x128xf32>
      tpu.vector_store %arg7[%c0_19, %c0_20], %38 {strides = array<i32>} : memref<8x128xf32, #tpu.memory_space<vmem>>, vector<8x128xf32>,
      %cst_21 = arith.constant 0.000000e+00 : f32
      %40 = vector.broadcast %cst_21 : f32 to vector<8x128xf32>
      %c0_22 = arith.constant 0 : index
      %c0_23 = arith.constant 0 : index
      %41 = vector.load %arg8[%c0_22, %c0_23] : memref<8x128xf32, #tpu.memory_space<vmem>>, vector<8x128xf32>
      tpu.vector_store %arg8[%c0_22, %c0_23], %40 {strides = array<i32>} : memref<8x128xf32, #tpu.memory_space<vmem>>, vector<8x128xf32>,
    } else {
    }
    %c1_i32 = arith.constant 1 : i32
    %3 = arith.muli %arg0, %c1_i32 : i32
    %4 = arith.addi %3, %arg1 : i32
    %c0 = arith.constant 0 : index
    %5 = memref.load %arg2[%c0] : memref<1xi32, #tpu.memory_space<smem>>
    %c0_1 = arith.constant 0 : index
    %c0_2 = arith.constant 0 : index
    %6 = vector.load %arg3[%c0_1, %c0_2] : memref<16x128xf32, #tpu.memory_space<vmem>>, vector<16x128xf32>
    %c0_3 = arith.constant 0 : index
    %c0_4 = arith.constant 0 : index
    %7 = vector.load %arg4[%c0_3, %c0_4] : memref<16x128xf32, #tpu.memory_space<vmem>>, vector<16x128xf32>
    %cst = arith.constant 0.000000e+00 : f32
    %8 = vector.broadcast %cst : f32 to vector<16x128xf32>
    %9 = arith.subf %8, %6 : vector<16x128xf32>
    %cst_5 = arith.constant 0.000000e+00 : f32
    %10 = vector.broadcast %cst_5 : f32 to vector<16x128xf32>
    %11 = arith.maximumf %9, %10 : vector<16x128xf32>
    %12 = math.absf %6 : vector<16x128xf32>
    %cst_6 = arith.constant 0.000000e+00 : f32
    %13 = vector.broadcast %cst_6 : f32 to vector<16x128xf32>
    %14 = arith.subf %13, %12 : vector<16x128xf32>
    %15 = math.exp %14 : vector<16x128xf32>
    %cst_7 = arith.constant 1.000000e+00 : f32
    %16 = vector.broadcast %cst_7 : f32 to vector<16x128xf32>
    %17 = arith.addf %16, %15 : vector<16x128xf32>
    %18 = math.log %17 : vector<16x128xf32>
    %19 = arith.addf %11, %18 : vector<16x128xf32>
    %20 = arith.addf %19, %6 : vector<16x128xf32>
    %cst_8 = arith.constant 18.420681 : f32
    %21 = vector.broadcast %cst_8 : f32 to vector<16x128xf32>
    %22 = arith.minimumf %20, %21 : vector<16x128xf32>
    %cst_9 = arith.constant 1.000000e-03 : f32
    %23 = vector.broadcast %cst_9 : f32 to vector<16x128xf32>
    %24 = arith.cmpf ogt, %7, %23 : vector<16x128xf32>
    %c1_i32_10 = arith.constant 1 : i32
    %25 = arith.addi %4, %c1_i32_10 : i32
    %c2048_i32 = arith.constant 2048 : i32
    %26 = arith.muli %25, %c2048_i32 : i32
    %27 = arith.cmpi sle, %26, %5 : i32
    %28 = arith.extui %27 : i1 to i32
    %c0_i32_11 = arith.constant 0 : i32
    %29 = arith.cmpi ne, %28, %c0_i32_11 : i32
    scf.if %29 {
      %cst_15 = arith.constant dense<true> : vector<16x128xi1>
      %36 = arith.xori %24, %cst_15 : vector<16x128xi1>
      %c0_16 = arith.constant 0 : index
      %c0_17 = arith.constant 0 : index
      %37 = vector.load %arg6[%c0_16, %c0_17] : memref<8x128xf32, #tpu.memory_space<vmem>>, vector<8x128xf32>
      %38 = arith.mulf %7, %19 : vector<16x128xf32>
      %cst_18 = arith.constant 0.000000e+00 : f32
      %39 = vector.broadcast %cst_18 : f32 to vector<16x128xf32>
      %40 = arith.select %24, %38, %39 : vector<16x128xi1>, vector<16x128xf32>
      %41 = vector.shape_cast %40 : vector<16x128xf32> to vector<2x8x128xf32>
      %cst_19 = arith.constant dense<0.000000e+00> : vector<8x128xf32>
      %42 = vector.multi_reduction <add>, %41, %cst_19 [0] : vector<2x8x128xf32> to vector<8x128xf32>
      %43 = arith.addf %37, %42 : vector<8x128xf32>
      %c0_20 = arith.constant 0 : index
      %c0_21 = arith.constant 0 : index
      %44 = vector.load %arg6[%c0_20, %c0_21] : memref<8x128xf32, #tpu.memory_space<vmem>>, vector<8x128xf32>
      tpu.vector_store %arg6[%c0_20, %c0_21], %43 {strides = array<i32>} : memref<8x128xf32, #tpu.memory_space<vmem>>, vector<8x128xf32>,
      %c0_22 = arith.constant 0 : index
      %c0_23 = arith.constant 0 : index
      %45 = vector.load %arg7[%c0_22, %c0_23] : memref<8x128xf32, #tpu.memory_space<vmem>>, vector<8x128xf32>
      %cst_24 = arith.constant 0.000000e+00 : f32
      %46 = vector.broadcast %cst_24 : f32 to vector<16x128xf32>
      %47 = arith.select %36, %22, %46 : vector<16x128xi1>, vector<16x128xf32>
      %48 = vector.shape_cast %47 : vector<16x128xf32> to vector<2x8x128xf32>
      %cst_25 = arith.constant dense<0.000000e+00> : vector<8x128xf32>
      %49 = vector.multi_reduction <add>, %48, %cst_25 [0] : vector<2x8x128xf32> to vector<8x128xf32>
      %50 = arith.addf %45, %49 : vector<8x128xf32>
      %c0_26 = arith.constant 0 : index
      %c0_27 = arith.constant 0 : index
      %51 = vector.load %arg7[%c0_26, %c0_27] : memref<8x128xf32, #tpu.memory_space<vmem>>, vector<8x128xf32>
      tpu.vector_store %arg7[%c0_26, %c0_27], %50 {strides = array<i32>} : memref<8x128xf32, #tpu.memory_space<vmem>>, vector<8x128xf32>,
      %c0_28 = arith.constant 0 : index
      %c0_29 = arith.constant 0 : index
      %52 = vector.load %arg8[%c0_28, %c0_29] : memref<8x128xf32, #tpu.memory_space<vmem>>, vector<8x128xf32>
      %53 = arith.extui %24 : vector<16x128xi1> to vector<16x128xi32>
      %54 = arith.sitofp %53 : vector<16x128xi32> to vector<16x128xf32>
      %55 = vector.shape_cast %54 : vector<16x128xf32> to vector<2x8x128xf32>
      %cst_30 = arith.constant dense<0.000000e+00> : vector<8x128xf32>
      %56 = vector.multi_reduction <add>, %55, %cst_30 [0] : vector<2x8x128xf32> to vector<8x128xf32>
      %57 = arith.addf %52, %56 : vector<8x128xf32>
      %c0_31 = arith.constant 0 : index
      %c0_32 = arith.constant 0 : index
      %58 = vector.load %arg8[%c0_31, %c0_32] : memref<8x128xf32, #tpu.memory_space<vmem>>, vector<8x128xf32>
      tpu.vector_store %arg8[%c0_31, %c0_32], %57 {strides = array<i32>} : memref<8x128xf32, #tpu.memory_space<vmem>>, vector<8x128xf32>,
    } else {
    }
    %true = arith.constant true
    %30 = arith.xori %27, %true : i1
    %31 = arith.extui %30 : i1 to i32
    %c0_i32_12 = arith.constant 0 : i32
    %32 = arith.cmpi ne, %31, %c0_i32_12 : i32
    scf.if %32 {
      %36 = tpu.iota {dimensions = array<i32: 0>} : vector<16x128xi32>
      %37 = tpu.iota {dimensions = array<i32: 1>} : vector<16x128xi32>
      %c2048_i32_15 = arith.constant 2048 : i32
      %38 = arith.muli %4, %c2048_i32_15 : i32
      %c128_i32 = arith.constant 128 : i32
      %39 = vector.broadcast %c128_i32 : i32 to vector<16x128xi32>
      %40 = arith.muli %36, %39 : vector<16x128xi32>
      %41 = vector.broadcast %38 : i32 to vector<16x128xi32>
      %42 = arith.addi %41, %40 : vector<16x128xi32>
      %43 = arith.addi %42, %37 : vector<16x128xi32>
      %44 = vector.broadcast %5 : i32 to vector<16x128xi32>
      %45 = arith.cmpi slt, %43, %44 : vector<16x128xi32>
      %46 = arith.andi %45, %24 : vector<16x128xi1>
      %cst_16 = arith.constant dense<true> : vector<16x128xi1>
      %47 = arith.xori %24, %cst_16 : vector<16x128xi1>
      %48 = arith.andi %45, %47 : vector<16x128xi1>
      %c0_17 = arith.constant 0 : index
      %c0_18 = arith.constant 0 : index
      %49 = vector.load %arg6[%c0_17, %c0_18] : memref<8x128xf32, #tpu.memory_space<vmem>>, vector<8x128xf32>
      %50 = arith.mulf %7, %19 : vector<16x128xf32>
      %cst_19 = arith.constant 0.000000e+00 : f32
      %51 = vector.broadcast %cst_19 : f32 to vector<16x128xf32>
      %52 = arith.select %46, %50, %51 : vector<16x128xi1>, vector<16x128xf32>
      %53 = vector.shape_cast %52 : vector<16x128xf32> to vector<2x8x128xf32>
      %cst_20 = arith.constant dense<0.000000e+00> : vector<8x128xf32>
      %54 = vector.multi_reduction <add>, %53, %cst_20 [0] : vector<2x8x128xf32> to vector<8x128xf32>
      %55 = arith.addf %49, %54 : vector<8x128xf32>
      %c0_21 = arith.constant 0 : index
      %c0_22 = arith.constant 0 : index
      %56 = vector.load %arg6[%c0_21, %c0_22] : memref<8x128xf32, #tpu.memory_space<vmem>>, vector<8x128xf32>
      tpu.vector_store %arg6[%c0_21, %c0_22], %55 {strides = array<i32>} : memref<8x128xf32, #tpu.memory_space<vmem>>, vector<8x128xf32>,
      %c0_23 = arith.constant 0 : index
      %c0_24 = arith.constant 0 : index
      %57 = vector.load %arg7[%c0_23, %c0_24] : memref<8x128xf32, #tpu.memory_space<vmem>>, vector<8x128xf32>
      %cst_25 = arith.constant 0.000000e+00 : f32
      %58 = vector.broadcast %cst_25 : f32 to vector<16x128xf32>
      %59 = arith.select %48, %22, %58 : vector<16x128xi1>, vector<16x128xf32>
      %60 = vector.shape_cast %59 : vector<16x128xf32> to vector<2x8x128xf32>
      %cst_26 = arith.constant dense<0.000000e+00> : vector<8x128xf32>
      %61 = vector.multi_reduction <add>, %60, %cst_26 [0] : vector<2x8x128xf32> to vector<8x128xf32>
      %62 = arith.addf %57, %61 : vector<8x128xf32>
      %c0_27 = arith.constant 0 : index
      %c0_28 = arith.constant 0 : index
      %63 = vector.load %arg7[%c0_27, %c0_28] : memref<8x128xf32, #tpu.memory_space<vmem>>, vector<8x128xf32>
      tpu.vector_store %arg7[%c0_27, %c0_28], %62 {strides = array<i32>} : memref<8x128xf32, #tpu.memory_space<vmem>>, vector<8x128xf32>,
      %c0_29 = arith.constant 0 : index
      %c0_30 = arith.constant 0 : index
      %64 = vector.load %arg8[%c0_29, %c0_30] : memref<8x128xf32, #tpu.memory_space<vmem>>, vector<8x128xf32>
      %65 = arith.extui %46 : vector<16x128xi1> to vector<16x128xi32>
      %66 = arith.sitofp %65 : vector<16x128xi32> to vector<16x128xf32>
      %67 = vector.shape_cast %66 : vector<16x128xf32> to vector<2x8x128xf32>
      %cst_31 = arith.constant dense<0.000000e+00> : vector<8x128xf32>
      %68 = vector.multi_reduction <add>, %67, %cst_31 [0] : vector<2x8x128xf32> to vector<8x128xf32>
      %69 = arith.addf %64, %68 : vector<8x128xf32>
      %c0_32 = arith.constant 0 : index
      %c0_33 = arith.constant 0 : index
      %70 = vector.load %arg8[%c0_32, %c0_33] : memref<8x128xf32, #tpu.memory_space<vmem>>, vector<8x128xf32>
      tpu.vector_store %arg8[%c0_32, %c0_33], %69 {strides = array<i32>} : memref<8x128xf32, #tpu.memory_space<vmem>>, vector<8x128xf32>,
    } else {
    }
    %c0_i32_13 = arith.constant 0 : i32
    %33 = arith.cmpi eq, %arg1, %c0_i32_13 : i32
    %34 = arith.extui %33 : i1 to i32
    %c0_i32_14 = arith.constant 0 : i32
    %35 = arith.cmpi ne, %34, %c0_i32_14 : i32
    scf.if %35 {
      %c0_15 = arith.constant 0 : index
      %c0_16 = arith.constant 0 : index
      %36 = vector.load %arg6[%c0_15, %c0_16] : memref<8x128xf32, #tpu.memory_space<vmem>>, vector<8x128xf32>
      %c0_17 = arith.constant 0 : index
      %c0_18 = arith.constant 0 : index
      %c0_19 = arith.constant 0 : index
      %c0_20 = arith.constant 0 : index
      %37 = vector.load %arg5[%c0_17, %c0_18, %c0_19, %c0_20] : memref<1x3x8x128xf32, #tpu.memory_space<vmem>>, vector<1x1x8x128xf32>
      %38 = vector.shape_cast %37 : vector<1x1x8x128xf32> to vector<8x128xf32>
      %39 = vector.shape_cast %36 : vector<8x128xf32> to vector<1x1x8x128xf32>
      tpu.vector_store %arg5[%c0_17, %c0_18, %c0_19, %c0_20], %39 {strides = array<i32>} : memref<1x3x8x128xf32, #tpu.memory_space<vmem>>, vector<1x1x8x128xf32>,
      %c0_21 = arith.constant 0 : index
      %c0_22 = arith.constant 0 : index
      %40 = vector.load %arg7[%c0_21, %c0_22] : memref<8x128xf32, #tpu.memory_space<vmem>>, vector<8x128xf32>
      %c0_23 = arith.constant 0 : index
      %c1 = arith.constant 1 : index
      %c0_24 = arith.constant 0 : index
      %c0_25 = arith.constant 0 : index
      %41 = vector.load %arg5[%c0_23, %c1, %c0_24, %c0_25] : memref<1x3x8x128xf32, #tpu.memory_space<vmem>>, vector<1x1x8x128xf32>
      %42 = vector.shape_cast %41 : vector<1x1x8x128xf32> to vector<8x128xf32>
      %43 = vector.shape_cast %40 : vector<8x128xf32> to vector<1x1x8x128xf32>
      tpu.vector_store %arg5[%c0_23, %c1, %c0_24, %c0_25], %43 {strides = array<i32>} : memref<1x3x8x128xf32, #tpu.memory_space<vmem>>, vector<1x1x8x128xf32>,
      %c0_26 = arith.constant 0 : index
      %c0_27 = arith.constant 0 : index
      %44 = vector.load %arg8[%c0_26, %c0_27] : memref<8x128xf32, #tpu.memory_space<vmem>>, vector<8x128xf32>
      %c0_28 = arith.constant 0 : index
      %c2 = arith.constant 2 : index
      %c0_29 = arith.constant 0 : index
      %c0_30 = arith.constant 0 : index
      %45 = vector.load %arg5[%c0_28, %c2, %c0_29, %c0_30] : memref<1x3x8x128xf32, #tpu.memory_space<vmem>>, vector<1x1x8x128xf32>
      %46 = vector.shape_cast %45 : vector<1x1x8x128xf32> to vector<8x128xf32>
      %47 = vector.shape_cast %44 : vector<8x128xf32> to vector<1x1x8x128xf32>
      tpu.vector_store %arg5[%c0_28, %c2, %c0_29, %c0_30], %47 {strides = array<i32>} : memref<1x3x8x128xf32, #tpu.memory_space<vmem>>, vector<1x1x8x128xf32>,
    } else {
    }
    return
  }
  func.func @transform_0(%arg0: i32, %arg1: i32, %arg2: memref<1xi32, #tpu.memory_space<smem>>) -> (i32, i32) {
    %c1_i32 = arith.constant 1 : i32
    %0 = arith.muli %arg0, %c1_i32 : i32
    %1 = arith.addi %0, %arg1 : i32
    %c0_i32 = arith.constant 0 : i32
    %2 = arith.minsi %1, %c0_i32 : i32
    %c0_i32_0 = arith.constant 0 : i32
    %c0_i32_1 = arith.constant 0 : i32
    return %2, %c0_i32_0 : i32, i32
  }
  func.func @transform_1(%arg0: i32, %arg1: i32, %arg2: memref<1xi32, #tpu.memory_space<smem>>) -> (i32, i32) {
    %c1_i32 = arith.constant 1 : i32
    %0 = arith.muli %arg0, %c1_i32 : i32
    %1 = arith.addi %0, %arg1 : i32
    %c0_i32 = arith.constant 0 : i32
    %2 = arith.minsi %1, %c0_i32 : i32
    %c0_i32_0 = arith.constant 0 : i32
    %c0_i32_1 = arith.constant 0 : i32
    return %2, %c0_i32_0 : i32, i32
  }
  func.func @transform_2(%arg0: i32, %arg1: i32, %arg2: memref<1xi32, #tpu.memory_space<smem>>) -> (i32, i32, i32, i32) {
    %c0_i32 = arith.constant 0 : i32
    %c0_i32_0 = arith.constant 0 : i32
    %c0_i32_1 = arith.constant 0 : i32
    %c0_i32_2 = arith.constant 0 : i32
    return %arg0, %c0_i32, %c0_i32_0, %c0_i32_1 : i32, i32, i32, i32
  }
}

</mosaic_0001>

<bundles_post_ra>
// kernel: ex_loss.1
= control target key start
LH: loop header
LB: loop body
LE: loop exit
PB: predicated region body
PF: predicated region fallthrough
CT: control target
= control target key end

     0   :  { %v244_v0 = vmov 0.0   ;;  %s338_s0 = inlined_call_operand.<no memory space> [shape: s32[1], index: 0, kind: input, shape index: {}]   ;;  %s339_s1 = inlined_call_operand.vmem [shape: f32[16,128], index: 1, kind: input, shape index: {}]   ;;  %s340_s2 = inlined_call_operand.vmem [shape: f32[16,128], index: 2, kind: input, shape index: {}]   ;;  %s341_s3 = inlined_call_operand.vmem [shape: f32[1,3,8,128], index: 3, kind: output, shape index: {}]  }
   0x1   :  { %81 = vst [vmem:[#allocation2] sm:$0xff] %v244_v0  ;;  %v86_v1 = vld [vmem:[%s339_s1] sm:$0xff]  ;;  %v87_v2 = vld [vmem:[%s339_s1 + $0x8] sm:$0xff]  ;;  %p222_p0 = scmp.lt.s32.totalorder %s338_s0, 2048 }
   0x2   :  { %v278_v3 = vld [vmem:[%s340_s2] sm:$0xff]  ;;  %82 = vst [vmem:[#allocation3] sm:$0xff] %v244_v0  ;;  %v283_v4 = vld [vmem:[%s340_s2 + $0x8] sm:$0xff]  ;;  %v94_v5 = vand.u32 2147483647, %v86_v1  ;;  %v90_v15 = vsub.f32 0.0, %v86_v1 }
   0x3   :  { %83 = vst [vmem:[#allocation4] sm:$0xff] %v244_v0  ;;  %v95_v6 = vand.u32 2147483647, %v87_v2  ;;  %vm114_vm0 = vcmp.gt.f32.partialorder %v278_v3, 0.001  ;;  %v91_v16 = vsub.f32 0.0, %v87_v2 }
   0x4   :  { %v96_v7 = vsub.f32 0.0, %v94_v5  ;;  %vm115_vm1 = vcmp.gt.f32.partialorder %v283_v4, 0.001  ;;  %v92_v17 = vmax.f32 %v90_v15, 0.0 }
   0x5   :  { %v97_v8 = vsub.f32 0.0, %v95_v6  ;;  %v93_v19 = vmax.f32 %v91_v16, 0.0 }
   0x6   :  { %v98_v9 = vmul.f32 1.442695, %v96_v7 }
   0x7   :  { %v100_v10 = vmul.f32 1.442695, %v97_v8 }
   0x8   :  { %236 = vpow2.f32 %v98_v9 }
   0x9   :  { %238 = vpow2.f32 %v100_v10 }
   0xe   :  { %v237_v11 = vpop.eup %236 }
   0xf   :  { %v239_v12 = vpop.eup %238  ;;  %v102_v13 = vadd.f32 1.0, %v237_v11 }
  0x10   :  { %v103_v14 = vadd.f32 1.0, %v239_v12 }
  0x11   :  { %240 = vlog2.f32 %v102_v13 }
  0x12   :  { %242 = vlog2.f32 %v103_v14 }
  0x17   :  { %v241_v18 = vpop.eup %240 }
  0x18   :  { %v243_v20 = vpop.eup %242  ;;  %v105_v21 = vmul.f32 0.6931472, %v241_v18 }
  0x19   :  { %v107_v22 = vmul.f32 0.6931472, %v243_v20 }
  0x1a   :  { %v108_v23 = vadd.f32 %v105_v21, %v92_v17 }
  0x1b   :  { %v109_v24 = vadd.f32 %v107_v22, %v93_v19  ;;  %121 = sbr.rel (%p222_p0) target bundleno = 41 (0x29), region = 17 }
  0x1c   :  { %v110_v25 = vadd.f32 %v108_v23, %v86_v1 }
  0x1d   :  { %v287_v26 = vadd.f32 %v109_v24, %v87_v2 }
  0x1e   :  { %v112_v27 = vmin.f32 %v110_v25, 18.420681 }
  0x1f   :  { %v113_v28 = vmin.f32 %v287_v26, 18.420681 }
  0x20   :  { %v125_v29 = vmul.f32 %v108_v23, %v278_v3  ;;  %v126_v30 = vmul.f32 %v109_v24, %v283_v4  ;;  %vm245_vm2 = vmmov 1   ;;  %v138_v31 = vld [vmem:[#allocation4] sm:$0xff]  ;;  %v246_v32 = vmov 0.0   ;;  %v124_v35 = vld [vmem:[#allocation2] sm:$0xff]  ;;  %v132_v41 = vld [vmem:[#allocation3] sm:$0xff] }
  0x21   :  { %vm122_vm3 = vmxor %vm114_vm0, %vm245_vm2  ;;  %v223_v33 = vsel %vm114_vm0, 1.0, %v246_v32  ;;  %v224_v34 = vsel %vm115_vm1, 1.0, %v246_v32 }
  0x22   :  { %v127_v36 = vsel %vm114_vm0, %v125_v29, 0.0  ;;  %v128_v37 = vsel %vm115_vm1, %v126_v30, 0.0  ;;  %vm123_vm4 = vmxor %vm115_vm1, %vm245_vm2  ;;  %v133_v38 = vsel %vm122_vm3, %v112_v27, 0.0  ;;  %v143_v39 = vadd.f32 %v224_v34, %v223_v33 }
  0x23   :  { %v129_v40 = vadd.f32 %v128_v37, %v127_v36  ;;  %v134_v42 = vsel %vm123_vm4, %v113_v28, 0.0 }
  0x24   :  { %v135_v43 = vadd.f32 %v134_v42, %v133_v38  ;;  %v144_v44 = vadd.f32 %v143_v39, %v138_v31 }
  0x25   :  { %v130_v45 = vadd.f32 %v129_v40, %v124_v35 }
  0x26   :  { %v136_v46 = vadd.f32 %v135_v43, %v132_v41  ;;  %145 = vst [vmem:[#allocation4] sm:$0xff] %v144_v44 }
  0x27   :  { %131 = vst [vmem:[#allocation2] sm:$0xff] %v130_v45 }
  0x28   :  { %137 = vst [vmem:[#allocation3] sm:$0xff] %v136_v46 }
  0x29 PF:  { %p226_p1 = scmp.ge.s32.totalorder %s338_s0, 2048 }
  0x2b   :  { %149 = sbr.rel (%p226_p1) target bundleno = 68 (0x44), region = 21 }
  0x30   :  { %v150_v47 = vlaneseq  ;;  %v163_v52 = vstv %s338_s0  ;;  %v173_v55 = vmul.f32 %v108_v23, %v278_v3  ;;  %vm247_vm5 = vmmov 1   ;;  %v172_v63 = vld [vmem:[#allocation2] sm:$0xff]  ;;  %v186_v1 = vld [vmem:[#allocation4] sm:$0xff]  ;;  %v180_v6 = vld [vmem:[#allocation3] sm:$0xff] }
  0x31   :  { %vm168_vm6 = vmxor %vm114_vm0, %vm247_vm5  ;;  %v174_v57 = vmul.f32 %v109_v24, %v283_v4  ;;  %v248_v60 = vmov 0.0  }
  0x32   :  { %v151_v48 = vshrl.u32 %v150_v47, 7  ;;  %v154_v49 = vand.u32 127, %v150_v47  ;;  %vm319_vm8 = vmxor %vm115_vm1, %vm247_vm5 }
  0x34   :  { %v152_v50 = vadd.s32 8, %v151_v48  ;;  %v156_v51 = vmul.u32 128, %v151_v48 }
  0x36   :  { %v157_v53 = vmul.u32 128, %v152_v50  ;;  %v161_v54 = vadd.s32 %v156_v51, %v154_v49 }
  0x38   :  { %v162_v56 = vadd.s32 %v157_v53, %v154_v49  ;;  %vm164_vm7 = vcmp.lt.s32.totalorder %v161_v54, %v163_v52 }
  0x39   :  { %vm166_vm9 = vmand %vm164_vm7, %vm114_vm0 }
  0x3a   :  { %vm165_vm10 = vcmp.lt.s32.totalorder %v162_v56, %v163_v52  ;;  %v175_v59 = vsel %vm166_vm9, %v173_v55, 0.0  ;;  %vm170_vm11 = vmand %vm164_vm7, %vm168_vm6  ;;  %v227_v61 = vsel %vm166_vm9, 1.0, %v248_v60 }
  0x3b   :  { %vm167_vm12 = vmand %vm165_vm10, %vm115_vm1  ;;  %v181_v62 = vsel %vm170_vm11, %v112_v27, 0.0 }
  0x3c   :  { %v176_v0 = vsel %vm167_vm12, %v174_v57, 0.0  ;;  %vm171_vm13 = vmand %vm165_vm10, %vm319_vm8  ;;  %v228_v2 = vsel %vm167_vm12, 1.0, %v248_v60 }
  0x3d   :  { %v177_v5 = vadd.f32 %v176_v0, %v175_v59  ;;  %v182_v3 = vsel %vm171_vm13, %v113_v28, 0.0  ;;  %v191_v7 = vadd.f32 %v228_v2, %v227_v61 }
  0x3e   :  { %v183_v8 = vadd.f32 %v182_v3, %v181_v62 }
  0x3f   :  { %v178_v9 = vadd.f32 %v177_v5, %v172_v63  ;;  %v192_v10 = vadd.f32 %v191_v7, %v186_v1 }
  0x40   :  { %v184_v11 = vadd.f32 %v183_v8, %v180_v6 }
  0x41   :  { %179 = vst [vmem:[#allocation2] sm:$0xff] %v178_v9 }
  0x42   :  { %185 = vst [vmem:[#allocation3] sm:$0xff] %v184_v11 }
  0x43   :  { %193 = vst [vmem:[#allocation4] sm:$0xff] %v192_v10 }
  0x44 PF:  {}
  0x48   :  { %v197_v4 = vld [vmem:[#allocation2] sm:$0xff] }
  0x49   :  { %v199_v12 = vld [vmem:[#allocation3] sm:$0xff]  ;;  %198 = vst [vmem:[%s341_s3] sm:$0xff] %v197_v4 }
  0x4a   :  { %v202_v13 = vld [vmem:[#allocation4] sm:$0xff]  ;;  %229 = vst [vmem:[%s341_s3 + $0x8] sm:$0xff] %v199_v12 }
  0x4b   :  { %230 = vst [vmem:[%s341_s3 + $0x10] sm:$0xff] %v202_v13 }

</bundles_post_ra>
